<compile_context>
chip_gen: v6e
topology: v6e:2x2x1
jax: 0.10.0
libtpu: 0.0.40
codegen_flags: <defaults>
</compile_context>

<pallas_src>
import jax
import jax.numpy as jnp
from jax.experimental import pallas as pl
from jax.experimental.pallas import tpu as pltpu

P_DIM = 128      # p_dim == p0_dim == 128 in the module defaults
NEG_SLOPE = 0.2  # LeakyReLU slope


def _round_up(n, m):
    return (n + m - 1) // m * m


def _leaky_relu(x):
    return jnp.where(x > 0, x, NEG_SLOPE * x)


def distr_kernel(x_ref, w1_ref, w2_ref, w3_ref, w4_ref, b_ref, o_ref):
    """Fused 4-layer MLP + residual + tanh, one batch tile per grid step.

    x_ref: (tile_b, 128) f32; w*_ref: (128, 128) bf16; b_ref: (8, 128) f32
    (rows 0..3 hold the four biases); o_ref: (tile_b, 128) f32.
    """
    x0 = x_ref[...]          # f32 activations / residual path
    biases = b_ref[...]      # (8, 128) f32

    def linear(x_f32, w_ref, bias_row):
        # bf16 operands on the MXU, f32 accumulation.
        acc = jnp.dot(x_f32.astype(jnp.bfloat16), w_ref[...],
                      preferred_element_type=jnp.float32)
        return acc + biases[bias_row, :][None, :]

    x = _leaky_relu(linear(x0, w1_ref, 0))   # fc_1 + LeakyReLU(0.2)
    x = _leaky_relu(linear(x, w2_ref, 1))    # fc_2 + LeakyReLU(0.2)
    x = _leaky_relu(linear(x, w3_ref, 2))    # fc_3 + LeakyReLU(0.2)
    x = linear(x, w4_ref, 3) + x0            # fc_4 (no nonlinearity) + residual
    o_ref[...] = jnp.tanh(x).astype(o_ref.dtype)


def _choose_tile_b(B):
    # Large tiles keep the MXU busy (M >> 8), but keep >= 2 grid steps when
    # possible so the "parallel" axis can shard across v7x's two TensorCores.
    tile = min(512, _round_up(max(pl.cdiv(B, 2), 8), 8))
    return min(tile, _round_up(B, 8))


def distr_network_forward(x0, params, *, tile_b=None):
    """x0: (B, 128) float32. params: dict with w1..w4 (128,128) and b1..b4 (1,128), f32.

    Note: for tiny batches (B <= ~64) a plain fused XLA dot chain will beat the
    kernel; the Pallas kernel pays off at large B.
    """
    B, D = x0.shape
    assert D == P_DIM
    if tile_b is None:
        tile_b = _choose_tile_b(B)
    tile_b = max(8, _round_up(tile_b, 8))
    grid = (pl.cdiv(B, tile_b),)

    # bf16 weights for the MXU fast path; f32 accumulation inside the kernel.
    w1 = params["w1"].astype(jnp.bfloat16)
    w2 = params["w2"].astype(jnp.bfloat16)
    w3 = params["w3"].astype(jnp.bfloat16)
    w4 = params["w4"].astype(jnp.bfloat16)

    # Pack the four (1,128) biases into one (8,128) f32 tile (rows 0..3 used).
    b_packed = jnp.concatenate(
        [params["b1"], params["b2"], params["b3"], params["b4"],
         jnp.zeros((4, D), jnp.float32)], axis=0)

    x_spec = pl.BlockSpec((tile_b, D), lambda i: (i, 0))
    # Constant index_maps: weight/bias blocks never change across grid steps,
    # so the pipeline keeps them resident in VMEM (no per-step re-fetch).
    w_spec = pl.BlockSpec((D, D), lambda i: (0, 0))
    b_spec = pl.BlockSpec((8, D), lambda i: (0, 0))

    w_bytes = 4 * D * D * 2            # 4 bf16 weight matrices
    cost = pl.CostEstimate(
        flops=2 * B * 4 * D * D,                      # 4 matmuls
        transcendentals=B * D,                        # tanh
        bytes_accessed=2 * B * D * 4 + w_bytes + 8 * D * 4,
    )

    return pl.pallas_call(
        distr_kernel,
        out_shape=jax.ShapeDtypeStruct((B, D), x0.dtype),
        grid_spec=pltpu.PrefetchScalarGridSpec(
            num_scalar_prefetch=0,
            grid=grid,
            in_specs=[x_spec, w_spec, w_spec, w_spec, w_spec, b_spec],
            out_specs=x_spec,
        ),
        compiler_params=pltpu.CompilerParams(
            dimension_semantics=("parallel",)),
        cost_estimate=cost,
    )(x0, w1, w2, w3, w4, b_packed)


def init_params(key, p_dim=P_DIM, p0_dim=P_DIM):
    """Deterministic synthetic parameters (uniform, torch-Linear-like scale)."""
    dims = [(p_dim, p0_dim), (p0_dim, p0_dim), (p0_dim, p0_dim), (p0_dim, p_dim)]
    params = {}
    for idx, (din, dout) in enumerate(dims, start=1):
        key, kw, kb = jax.random.split(key, 3)
        bound = 1.0 / jnp.sqrt(jnp.float32(din))
        # stored as (in, out)  ==  torch weight (out, in) transposed
        params[f"w{idx}"] = jax.random.uniform(
            kw, (din, dout), jnp.float32, -bound, bound)
        params[f"b{idx}"] = jax.random.uniform(
            kb, (1, dout), jnp.float32, -bound, bound)
    return params


def reference_forward(x0, params):
    """Plain-JAX reference emulating the kernel's bf16-operand matmuls."""
    def mm(a_f32, w_f32):
        a = a_f32.astype(jnp.bfloat16).astype(jnp.float32)
        w = w_f32.astype(jnp.bfloat16).astype(jnp.float32)
        return jnp.dot(a, w)

    x = _leaky_relu(mm(x0, params["w1"]) + params["b1"])
    x = _leaky_relu(mm(x, params["w2"]) + params["b2"])
    x = _leaky_relu(mm(x, params["w3"]) + params["b3"])
    x = (mm(x, params["w4"]) + params["b4"]) + x0
    return jnp.tanh(x)


if __name__ == "__main__":
    key = jax.random.PRNGKey(0)
    key, kx = jax.random.split(key)

    batch = 16  # small demo shape; tile_b=8 below exercises a 2-step grid
    x0 = jax.random.normal(kx, (batch, P_DIM), jnp.float32)
    params = init_params(key)

    out = distr_network_forward(x0, params, tile_b=8)
    out = jax.block_until_ready(out)

    ref = reference_forward(x0, params)
    assert out.shape == (batch, P_DIM)
    assert jnp.allclose(out, ref, atol=2e-3, rtol=2e-3), "mismatch vs reference"

    print("KERNEL_OK")
</pallas_src>

<mosaic_0001>
module attributes {stable_mosaic.version = 11 : i64} {
  func.func @distr_kernel(%arg0: i32, %arg1: memref<8x128xf32, #tpu.memory_space<vmem>>, %arg2: memref<128x128xbf16, #tpu.memory_space<vmem>>, %arg3: memref<128x128xbf16, #tpu.memory_space<vmem>>, %arg4: memref<128x128xbf16, #tpu.memory_space<vmem>>, %arg5: memref<128x128xbf16, #tpu.memory_space<vmem>>, %arg6: memref<8x128xf32, #tpu.memory_space<vmem>>, %arg7: memref<8x128xf32, #tpu.memory_space<vmem>>) attributes {dimension_semantics = [#tpu.dimension_semantics<parallel>], iteration_bounds = array<i64: 2>, scalar_prefetch = 0 : i64, scratch_operands = 0 : i64, tpu.core_type = #tpu.core_type<tc>, window_params = [{transform_indices = @transform_0, window_bounds = array<i64: 8, 128>}, {pipeline_mode = #tpu.pipeline_mode<synchronous>, transform_indices = @transform_1, window_bounds = array<i64: 128, 128>}, {pipeline_mode = #tpu.pipeline_mode<synchronous>, transform_indices = @transform_2, window_bounds = array<i64: 128, 128>}, {pipeline_mode = #tpu.pipeline_mode<synchronous>, transform_indices = @transform_3, window_bounds = array<i64: 128, 128>}, {pipeline_mode = #tpu.pipeline_mode<synchronous>, transform_indices = @transform_4, window_bounds = array<i64: 128, 128>}, {pipeline_mode = #tpu.pipeline_mode<synchronous>, transform_indices = @transform_5, window_bounds = array<i64: 8, 128>}, {transform_indices = @transform_6, window_bounds = array<i64: 8, 128>}]} {
    %c0 = arith.constant 0 : index
    %c0_0 = arith.constant 0 : index
    %0 = vector.load %arg1[%c0, %c0_0] : memref<8x128xf32, #tpu.memory_space<vmem>>, vector<8x128xf32>
    %c0_1 = arith.constant 0 : index
    %c0_2 = arith.constant 0 : index
    %1 = vector.load %arg6[%c0_1, %c0_2] : memref<8x128xf32, #tpu.memory_space<vmem>>, vector<8x128xf32>
    %2 = arith.truncf %0 : vector<8x128xf32> to vector<8x128xbf16>
    %c0_3 = arith.constant 0 : index
    %c0_4 = arith.constant 0 : index
    %3 = vector.load %arg2[%c0_3, %c0_4] : memref<128x128xbf16, #tpu.memory_space<vmem>>, vector<128x128xbf16>
    %cst = arith.constant dense<0.000000e+00> : vector<8x128xf32>
    %4 = tpu.matmul %2, %3, %cst {dimension_numbers = #tpu.dot_dimension_numbers<[1], [0], [0], [1], [0, 0, 1, 1], [], []>} : vector<8x128xbf16>, vector<128x128xbf16>, vector<8x128xf32> -> vector<8x128xf32>
    %5 = vector.extract_strided_slice %1 {offsets = [0, 0], sizes = [1, 128], strides = [1, 1]} : vector<8x128xf32> to vector<1x128xf32>
    %6 = vector.shape_cast %5 : vector<1x128xf32> to vector<128xf32>
    %7 = vector.shape_cast %6 : vector<128xf32> to vector<1x128xf32>
    %8 = vector.broadcast %7 : vector<1x128xf32> to vector<8x128xf32>
    %9 = arith.addf %4, %8 : vector<8x128xf32>
    %cst_5 = arith.constant 0.000000e+00 : f32
    %10 = vector.broadcast %cst_5 : f32 to vector<8x128xf32>
    %11 = arith.cmpf ogt, %9, %10 : vector<8x128xf32>
    %cst_6 = arith.constant 2.000000e-01 : f32
    %12 = vector.broadcast %cst_6 : f32 to vector<8x128xf32>
    %13 = arith.mulf %12, %9 : vector<8x128xf32>
    %14 = arith.select %11, %9, %13 : vector<8x128xi1>, vector<8x128xf32>
    %15 = arith.truncf %14 : vector<8x128xf32> to vector<8x128xbf16>
    %c0_7 = arith.constant 0 : index
    %c0_8 = arith.constant 0 : index
    %16 = vector.load %arg3[%c0_7, %c0_8] : memref<128x128xbf16, #tpu.memory_space<vmem>>, vector<128x128xbf16>
    %cst_9 = arith.constant dense<0.000000e+00> : vector<8x128xf32>
    %17 = tpu.matmul %15, %16, %cst_9 {dimension_numbers = #tpu.dot_dimension_numbers<[1], [0], [0], [1], [0, 0, 1, 1], [], []>} : vector<8x128xbf16>, vector<128x128xbf16>, vector<8x128xf32> -> vector<8x128xf32>
    %18 = vector.extract_strided_slice %1 {offsets = [1, 0], sizes = [1, 128], strides = [1, 1]} : vector<8x128xf32> to vector<1x128xf32>
    %19 = vector.shape_cast %18 : vector<1x128xf32> to vector<128xf32>
    %20 = vector.shape_cast %19 : vector<128xf32> to vector<1x128xf32>
    %21 = vector.broadcast %20 : vector<1x128xf32> to vector<8x128xf32>
    %22 = arith.addf %17, %21 : vector<8x128xf32>
    %cst_10 = arith.constant 0.000000e+00 : f32
    %23 = vector.broadcast %cst_10 : f32 to vector<8x128xf32>
    %24 = arith.cmpf ogt, %22, %23 : vector<8x128xf32>
    %cst_11 = arith.constant 2.000000e-01 : f32
    %25 = vector.broadcast %cst_11 : f32 to vector<8x128xf32>
    %26 = arith.mulf %25, %22 : vector<8x128xf32>
    %27 = arith.select %24, %22, %26 : vector<8x128xi1>, vector<8x128xf32>
    %28 = arith.truncf %27 : vector<8x128xf32> to vector<8x128xbf16>
    %c0_12 = arith.constant 0 : index
    %c0_13 = arith.constant 0 : index
    %29 = vector.load %arg4[%c0_12, %c0_13] : memref<128x128xbf16, #tpu.memory_space<vmem>>, vector<128x128xbf16>
    %cst_14 = arith.constant dense<0.000000e+00> : vector<8x128xf32>
    %30 = tpu.matmul %28, %29, %cst_14 {dimension_numbers = #tpu.dot_dimension_numbers<[1], [0], [0], [1], [0, 0, 1, 1], [], []>} : vector<8x128xbf16>, vector<128x128xbf16>, vector<8x128xf32> -> vector<8x128xf32>
    %31 = vector.extract_strided_slice %1 {offsets = [2, 0], sizes = [1, 128], strides = [1, 1]} : vector<8x128xf32> to vector<1x128xf32>
    %32 = vector.shape_cast %31 : vector<1x128xf32> to vector<128xf32>
    %33 = vector.shape_cast %32 : vector<128xf32> to vector<1x128xf32>
    %34 = vector.broadcast %33 : vector<1x128xf32> to vector<8x128xf32>
    %35 = arith.addf %30, %34 : vector<8x128xf32>
    %cst_15 = arith.constant 0.000000e+00 : f32
    %36 = vector.broadcast %cst_15 : f32 to vector<8x128xf32>
    %37 = arith.cmpf ogt, %35, %36 : vector<8x128xf32>
    %cst_16 = arith.constant 2.000000e-01 : f32
    %38 = vector.broadcast %cst_16 : f32 to vector<8x128xf32>
    %39 = arith.mulf %38, %35 : vector<8x128xf32>
    %40 = arith.select %37, %35, %39 : vector<8x128xi1>, vector<8x128xf32>
    %41 = arith.truncf %40 : vector<8x128xf32> to vector<8x128xbf16>
    %c0_17 = arith.constant 0 : index
    %c0_18 = arith.constant 0 : index
    %42 = vector.load %arg5[%c0_17, %c0_18] : memref<128x128xbf16, #tpu.memory_space<vmem>>, vector<128x128xbf16>
    %cst_19 = arith.constant dense<0.000000e+00> : vector<8x128xf32>
    %43 = tpu.matmul %41, %42, %cst_19 {dimension_numbers = #tpu.dot_dimension_numbers<[1], [0], [0], [1], [0, 0, 1, 1], [], []>} : vector<8x128xbf16>, vector<128x128xbf16>, vector<8x128xf32> -> vector<8x128xf32>
    %44 = vector.extract_strided_slice %1 {offsets = [3, 0], sizes = [1, 128], strides = [1, 1]} : vector<8x128xf32> to vector<1x128xf32>
    %45 = vector.shape_cast %44 : vector<1x128xf32> to vector<128xf32>
    %46 = vector.shape_cast %45 : vector<128xf32> to vector<1x128xf32>
    %47 = vector.broadcast %46 : vector<1x128xf32> to vector<8x128xf32>
    %48 = arith.addf %43, %47 : vector<8x128xf32>
    %49 = arith.addf %48, %0 : vector<8x128xf32>
    %50 = math.tanh %49 : vector<8x128xf32>
    %c0_20 = arith.constant 0 : index
    %c0_21 = arith.constant 0 : index
    %51 = vector.load %arg7[%c0_20, %c0_21] : memref<8x128xf32, #tpu.memory_space<vmem>>, vector<8x128xf32>
    tpu.vector_store %arg7[%c0_20, %c0_21], %50 {strides = array<i32>} : memref<8x128xf32, #tpu.memory_space<vmem>>, vector<8x128xf32>,
    return
  }
  func.func @transform_0(%arg0: i32) -> (i32, i32) {
    %c0_i32 = arith.constant 0 : i32
    %c0_i32_0 = arith.constant 0 : i32
    return %arg0, %c0_i32 : i32, i32
  }
  func.func @transform_1(%arg0: i32) -> (i32, i32) {
    %c0_i32 = arith.constant 0 : i32
    %c0_i32_0 = arith.constant 0 : i32
    %c0_i32_1 = arith.constant 0 : i32
    return %c0_i32, %c0_i32_0 : i32, i32
  }
  func.func @transform_2(%arg0: i32) -> (i32, i32) {
    %c0_i32 = arith.constant 0 : i32
    %c0_i32_0 = arith.constant 0 : i32
    %c0_i32_1 = arith.constant 0 : i32
    return %c0_i32, %c0_i32_0 : i32, i32
  }
  func.func @transform_3(%arg0: i32) -> (i32, i32) {
    %c0_i32 = arith.constant 0 : i32
    %c0_i32_0 = arith.constant 0 : i32
    %c0_i32_1 = arith.constant 0 : i32
    return %c0_i32, %c0_i32_0 : i32, i32
  }
  func.func @transform_4(%arg0: i32) -> (i32, i32) {
    %c0_i32 = arith.constant 0 : i32
    %c0_i32_0 = arith.constant 0 : i32
    %c0_i32_1 = arith.constant 0 : i32
    return %c0_i32, %c0_i32_0 : i32, i32
  }
  func.func @transform_5(%arg0: i32) -> (i32, i32) {
    %c0_i32 = arith.constant 0 : i32
    %c0_i32_0 = arith.constant 0 : i32
    %c0_i32_1 = arith.constant 0 : i32
    return %c0_i32, %c0_i32_0 : i32, i32
  }
  func.func @transform_6(%arg0: i32) -> (i32, i32) {
    %c0_i32 = arith.constant 0 : i32
    %c0_i32_0 = arith.constant 0 : i32
    return %arg0, %c0_i32 : i32, i32
  }
}

</mosaic_0001>

<bundles_post_ra>
// kernel: tpu_custom_call.1
= control target key start
LH: loop header
LB: loop body
LE: loop exit
PB: predicated region body
PF: predicated region fallthrough
CT: control target
= control target key end

     0   :  { %s1730_s0 = inlined_call_operand.hbm [shape: f32[16,128], index: 0, kind: input, shape index: {}]   ;;  %s1731_s1 = inlined_call_operand.hbm [shape: bf16[128,128], index: 1, kind: input, shape index: {}]   ;;  %s1732_s2 = inlined_call_operand.hbm [shape: bf16[128,128], index: 2, kind: input, shape index: {}]   ;;  %s1733_s3 = inlined_call_operand.hbm [shape: bf16[128,128], index: 3, kind: input, shape index: {}]   ;;  %s1734_s4 = inlined_call_operand.hbm [shape: bf16[128,128], index: 4, kind: input, shape index: {}]   ;;  %s1735_s5 = inlined_call_operand.vmem [shape: f32[8,128], index: 5, kind: input, shape index: {}]   ;;  %s1736_s6 = inlined_call_operand.hbm [shape: f32[16,128], index: 6, kind: output, shape index: {}]  }
   0x1   :  { %1741 = sst [smem:[#allocation16_spill]] %s1731_s1 }
   0x2   :  { %11 = vsyncpa [#allocation3], 0 }
   0x3   :  { %13 = vsyncpa [#allocation3 + $0x1], 0 }
   0x4   :  { %14 = vsyncpa [#allocation6], 0 }
   0x5   :  { %15 = vsyncpa [#allocation9], 0 }
   0x6   :  { %16 = vsyncpa [#allocation4], 0 }
   0x7   :  { %18 = vsyncpa [#allocation4 + $0x1], 0  ;;  %s1442_s21 = smov 0   ;;  %s1444_s22 = smov 0  }
   0x8   :  { %s1446_s23 = smov 0   ;;  %s1448_s24 = smov 0  }
   0x9 LB: > { %s1397_s25 = smov [#allocation5]   ;;  %s1463_s27 = sadd.s32 4294967295, %s1395_s24   ;;  %s1395_s24 = sphi %s1448_s24, %s1762_s24   ;;  %s1391_s23 = sphi %s1446_s23, %s1761_s23   ;;  %s1387_s22 = sphi %s1444_s22, %s1760_s22   ;;  %s1383_s21 = sphi %s1442_s21, %s1759_s21  }
   0xa   : > { %s198_s26 = sshll.u32 %s1397_s25, 4  ;;  %p899_p0 = scmp.ge.s32.totalorder %s1395_s24, 1  ;;  %s199_s26 = int_to_ptr.vmem [resolvable:$true] %s198_s26 }
   0xb   : > { %p1737_p1 = scmp.eq.s32.totalorder %s1463_s27, 0  ;;  %p186_p2 = scmp.lt.s32.totalorder %s1395_s24, 3 }
   0xc   : > { %s1398_s29 = smov [#allocation8]   ;;  %s1399_s8 = smov [#allocation7]  }
   0xd   : > { %p1468_p3 = pnand %p899_p0, %p186_p2  ;;  %s224_s30 = sshll.u32 %s1398_s29, 4  ;;  %s1481_s30 = int_to_ptr.vmem [resolvable:$true] %s224_s30 }
   0xe   : > { %s211_s9 = sshll.u32 %s1399_s8, 4  ;;  %s1202_s10 = scalar_lea.vmem %s199_s26, 1024  ;;  %s1483_s9 = int_to_ptr.vmem [resolvable:$true] %s211_s9 }
   0xf   : > { %s1742_s28 = scalar_select %p1468_p3, 1, 0 }
  0x10   : > { %p1086_p5 = pneg %p1468_p3  ;;  %p1203_p8 = scmp.ne.s32.totalorder %s199_s26, %s1202_s10 }
  0x11   : > { %p1210_p11 = scmp.lt.s32.totalorder %s199_s26, %s199_s26  ;;  %p1211_p12 = scmp.lt.s32.totalorder %s1202_s10, %s1202_s10 }
  0x12   : > { %p1477_p6 = pnand %p1086_p5, %p1737_p1 }
  0x13   : > { %p1212_p13 = por %p1211_p12, %p1210_p11 }
  0x14   : > { %p1193_p7 = pneg %p1477_p6 }
  0x16   : > { %p1205_p9 = pnand %p1203_p8, %p1193_p7 }
  0x18   : > { %p1206_p10 = pneg %p1205_p9 }
  0x1a   : > { %p1213_p0 = pnand %p1212_p13, %p1206_p10 }
  0x1c   : > { %1216 = shalt.err (!%p1213_p0)
}
  0x1d   : > { %s1400_s11 = smov 64   ;;  %s1401_s12 = smov 4  }
  0x1e   : > { %s1744_s1 = sld [smem:[#allocation16_spill]]  ;;  %s1228_s15 = scalar_lea.vmem %s1481_s30, 1024 }
  0x1f   : > { %p1229_p2 = scmp.ne.s32.totalorder %s1481_s30, %s1228_s15  ;;  %p1236_p9 = scmp.lt.s32.totalorder %s1481_s30, %s1481_s30 }
  0x20   : > { %p1237_p10 = scmp.lt.s32.totalorder %s1228_s15, %s1228_s15 }
  0x21   : > { %p1231_p5 = pnand %p1229_p2, %p1193_p7 }
  0x22   : > { %p1238_p11 = por %p1237_p10, %p1236_p9 }
  0x23   : > { %p1232_p8 = pneg %p1231_p5 }
  0x24   : > { %1089 = dma.hbm_to_vmem [thread:$0]  (!%p1477_p6), %s1744_s1, 1024, %s199_s26, [#allocation6], %s1400_s11, %s1400_s11, %s1401_s12  }
  0x25   : > { %p1239_p12 = pnand %p1238_p11, %p1232_p8 }
  0x27   : > { %1242 = shalt.err (!%p1239_p12)
}
  0x28   : > { %1095 = dma.hbm_to_vmem [thread:$0]  (!%p1477_p6), %s1733_s3, 1024, %s1481_s30, [#allocation9], %s1400_s11, %s1400_s11, %s1401_s12  }
  0x29   : > { %s1254_s18 = scalar_lea.vmem %s1483_s9, 1024  ;;  %p1262_p5 = scmp.lt.s32.totalorder %s1483_s9, %s1483_s9 }
  0x2a   : > { %p1255_p13 = scmp.ne.s32.totalorder %s1483_s9, %s1254_s18  ;;  %p1263_p8 = scmp.lt.s32.totalorder %s1254_s18, %s1254_s18 }
  0x2c   : > { %p1257_p0 = pnand %p1255_p13, %p1193_p7  ;;  %p1264_p9 = por %p1263_p8, %p1262_p5 }
  0x2e   : > { %p1258_p2 = pneg %p1257_p0 }
  0x30   : > { %p1265_p10 = pnand %p1264_p9, %p1258_p2 }
  0x32   : > { %1268 = shalt.err (!%p1265_p10)
}
  0x33   : > { %1092 = dma.hbm_to_vmem [thread:$0]  (!%p1477_p6), %s1732_s2, 1024, %s1483_s9, [#allocation6], %s1400_s11, %s1400_s11, %s1401_s12  }
  0x34   : > { %s1402_s25 = smov [#allocation10]  }
  0x35   : > { %s237_s26 = sshll.u32 %s1402_s25, 4  ;;  %s238_s26 = int_to_ptr.vmem [resolvable:$true] %s237_s26 }
  0x36   : > { %s1280_s29 = scalar_lea.vmem %s238_s26, 1024  ;;  %p1288_p0 = scmp.lt.s32.totalorder %s238_s26, %s238_s26 }
  0x37   : > { %p1281_p11 = scmp.ne.s32.totalorder %s238_s26, %s1280_s29  ;;  %p1289_p2 = scmp.lt.s32.totalorder %s1280_s29, %s1280_s29 }
  0x39   : > { %p1283_p12 = pnand %p1281_p11, %p1193_p7  ;;  %p1290_p5 = por %p1289_p2, %p1288_p0 }
  0x3b   : > { %p1284_p13 = pneg %p1283_p12 }
  0x3d   : > { %p1291_p8 = pnand %p1290_p5, %p1284_p13 }
  0x3f   : > { %1294 = shalt.err (!%p1291_p8)
}
  0x40   : > { %1098 = dma.hbm_to_vmem [thread:$0]  (!%p1477_p6), %s1734_s4, 1024, %s238_s26, [#allocation9], %s1400_s11, %s1400_s11, %s1401_s12  }
  0x41   : > { %s898_s7 = sadd.s32 4294967294, %s1395_s24   ;;  %s1543_s9 = sadd.s32 1, %s1395_s24  }
  0x42   : > { %s28_s10 = ssub.s32 %s1395_s24, %s1543_s9  ;;  %s31_s13 = sadd.s32 1, %s1391_s23 }
  0x43   : > { %p29_p7 = scmp.eq.s32.totalorder %s28_s10, 0  ;;  %p38_p9 = scmp.ne.s32.totalorder %s1391_s23, %s1387_s22 }
  0x44   : > { %p39_p10 = scmp.eq.s32.totalorder %s1395_s24, 0  ;;  %p44_p11 = scmp.ne.s32.totalorder %s1387_s22, %s1383_s21 }
  0x45   : > { %s1554_s14 = scalar_select %p29_p7, %s1391_s23, %s31_s13  }
  0x46   : > { %p1556_p12 = por %p39_p10, %p38_p9  ;;  %p1562_p6 = por %p1737_p1, %p44_p11 }
  0x47   : > { %p173_p13 = scmp.eq.s32.totalorder %s1463_s27, 1  ;;  %p179_p0 = scmp.eq.s32.totalorder %s898_s7, 1 }
  0x48   : > { %s1746_s11 = scalar_select %p1562_p6, 1, 0 }
  0x49   : > { %p1111_p2 = scmp.lt.s32.totalorder %s1395_s24, 2  ;;  %s254_s12 = sand.u32 1, %s1391_s23  }
  0x4a   : > { %p1569_p5 = por %p173_p13, %p38_p9  ;;  %p1573_p8 = por %p179_p0, %p44_p11 }
  0x4b   : > { %s905_s18 = sshll.u32 %s254_s12, 3  ;;  %s906_s19 = sshll.u32 %s1395_s24, 7 }
  0x4c   : > { %s1747_s16 = scalar_select %p1569_p5, 1, 0 }
  0x4d   : > { %s1748_s17 = scalar_select %p1573_p8, 1, 0 }
  0x4e   : > { %s1581_s26 = scalar_lea.hbm %s1730_s0, %s906_s19  ;;  %s258_s29 = scalar_lea.vmem [#allocation2], %s905_s18 }
  0x4f   : > { %s265_s30 = sshll.u32 %s258_s29, 4  ;;  %p1585_p7 = pnand %p1111_p2, %p1556_p12  ;;  %s266_s30 = int_to_ptr.vmem [resolvable:$true] %s265_s30 }
  0x50   : > { %s255_s7 = scalar_lea.sflag [#allocation3], %s254_s12  ;;  %s1295_s10 = scalar_lea.hbm %s1581_s26, 128 }
  0x51   : > { %p1296_p9 = scmp.ne.s32.totalorder %s1581_s26, %s1295_s10  ;;  %p1297_p10 = pneg %p1585_p7 }
  0x52   : > { %s1300_s20 = scalar_lea.hbm %s1730_s0, 256  ;;  %p1301_p0 = scmp.lt.s32.totalorder %s1581_s26, %s1730_s0 }
  0x53   : > { %p1298_p11 = pnand %p1297_p10, %p1296_p9  ;;  %p1302_p12 = scmp.lt.s32.totalorder %s1300_s20, %s1295_s10 }
  0x55   : > { %p1299_p13 = pneg %p1298_p11  ;;  %p1303_p2 = por %p1302_p12, %p1301_p0 }
  0x57   : > { %p1304_p4 = pnand %p1303_p2, %p1299_p13 }
  0x59   : > { %1307 = shalt.err (!%p1304_p4)
}
  0x5a   : > { %s1308_s15 = scalar_lea.vmem %s266_s30, 128  ;;  %s1403_s12 = smov [#allocation2]  }
  0x5b   : > { %p1309_p1 = scmp.ne.s32.totalorder %s266_s30, %s1308_s15  ;;  %s1313_s29 = sshll.u32 %s1403_s12, 4  ;;  %s1314_s29 = int_to_ptr.vmem [resolvable:$false] %s1313_s29 }
  0x5c   : > { %s1315_s1 = scalar_lea.vmem %s1314_s29, 256  ;;  %p1316_p9 = scmp.lt.s32.totalorder %s266_s30, %s1314_s29 }
  0x5d   : > { %p1311_p8 = pnand %p1309_p1, %p1297_p10  ;;  %p1317_p11 = scmp.lt.s32.totalorder %s1315_s1, %s1308_s15 }
  0x5f   : > { %p1312_p5 = pneg %p1311_p8  ;;  %p1318_p6 = por %p1317_p11, %p1316_p9 }
  0x61   : > { %p1319_p3 = pnand %p1318_p6, %p1312_p5 }
  0x63   : > { %1322 = shalt.err (!%p1319_p3)
}
  0x64   : > { %1102 = dma.hbm_to_vmem [thread:$0]  (!%p1585_p7), %s1581_s26, 128, %s266_s30, %s255_s7  }
  0x65   : > { %p1750_p13 = scmp.ne.s32.totalorder %s1742_s28, 0 }
  0x66   : > { %s1606_s10 = sand.u32 (!%p1750_p13), 1, %s1387_s22   ;;  %p1751_p1 = scmp.ne.s32.totalorder (!%p1750_p13), %s1746_s11, 0 }
  0x67   : > { %274 = sbr.rel (%p1750_p13) target bundleno = 973 (0x3cd), region = 44  ;;  %s908_s13 = sshll.u32 (!%p1750_p13), %s1606_s10, 3 }
  0x68   : > { %s277_s19 = scalar_lea.sflag (!%p1750_p13), [#allocation3], %s1606_s10  ;;  %s1612_s1 = scalar_lea.vmem (!%p1750_p13), [#allocation2], %s908_s13 }
  0x6c   : > { %1366 = dma.done.wait (%p1751_p1), %s277_s19, 128  }
  0x6d   : > { %1368 = vsyncadd (%p1751_p1), %s277_s19, 4294967168  ;;  %p1752_p3 = scmp.eq.s32.totalorder %s1463_s27, 0 }
  0x6f   : > { %1370 = dma.done.wait (%p1752_p3), [#allocation6], 2048   ;;  %p1753_p4 = pmov %p1752_p3 }
  0x70   : > { %p1754_p6 = pmov %p1752_p3 }
  0x71   : > { %1372 = vsyncadd (%p1753_p4), [#allocation6], 4294965248 }
  0x72   : > { %1374 = dma.done.wait (%p1754_p6), [#allocation9], 2048   ;;  %p1755_p5 = pmov %p1752_p3 }
  0x73   : > { %v1404_v0 = vmov 0.0   ;;  %vm1405_vm0 = vmmov 0   ;;  %v1157_v1 = vld [vmem:[#allocation5 + $0x38] sm:$0xff]   ;;  %v1158_v2 = vld [vmem:[#allocation5 + $0x30] sm:$0xff]   ;;  %v1159_v3 = vld [vmem:[#allocation5 + $0x28] sm:$0xff]   ;;  %v345_v25 = vlaneseq  ;;  %s947_s26 = sshll.u32 %s1463_s27, 7 }
  0x74   : > { %1376 = vsyncadd (%p1755_p5), [#allocation9], 4294965248  ;;  %986 = vmatprep.subr.bf16.mxu0 %v1404_v0  ;;  %1002 = vmatprep.mubr.msk.bf16.mxu0 %vm1405_vm0, %v1404_v0  ;;  %v1165_v4 = vld [vmem:[#allocation7 + $0x38] sm:$0xff]   ;;  %v1160_v5 = vld [vmem:[#allocation5 + $0x20] sm:$0xff]   ;;  %s324_s30 = scalar_lea.vmem [#allocation11], %s908_s13  ;;  %s1693_s18 = scalar_lea.hbm %s1736_s6, %s947_s26 }
  0x75   : > { %1006 = vmatprep.subr.bf16.mxu1 %v1404_v0  ;;  %1022 = vmatprep.mubr.msk.bf16.mxu1 %vm1405_vm0, %v1404_v0  ;;  %v1166_v6 = vld [vmem:[#allocation7 + $0x30] sm:$0xff]   ;;  %v1161_v7 = vld [vmem:[#allocation5 + $0x18] sm:$0xff]   ;;  %v1167_v8 = vld [vmem:[#allocation7 + $0x28] sm:$0xff]   ;;  %v1661_v26 = vshrl.u32 %v345_v25, 7  ;;  %s790_s8 = sshll.u32 %s324_s30, 4  ;;  %s777_s25 = scalar_lea.sflag [#allocation4], %s1606_s10  ;;  %s791_s8 = int_to_ptr.vmem [resolvable:$true] %s790_s8 }
  0x76   : > { %987 = vmatpush3.bf16.msra.mxu0 %v1157_v1  ;;  %1007 = vmatpush3.bf16.msra.mxu1 %v1165_v4  ;;  %v1162_v9 = vld [vmem:[#allocation5 + $0x10] sm:$0xff]   ;;  %v1168_v10 = vld [vmem:[#allocation7 + $0x20] sm:$0xff]   ;;  %v1163_v11 = vld [vmem:[#allocation5 + $0x8] sm:$0xff]   ;;  %s1323_s15 = scalar_lea.vmem %s791_s8, 128  ;;  %p1756_p7 = scmp.ne.s32.totalorder %s1747_s16, 0 }
  0x77   : > { %988 = vmatprep.subr.bf16.mxu0 %v1404_v0  ;;  %1008 = vmatprep.subr.bf16.mxu1 %v1404_v0  ;;  %v1169_v12 = vld [vmem:[#allocation7 + $0x18] sm:$0xff]   ;;  %v1164_v13 = vld [vmem:[#allocation5] sm:$0xff]   ;;  %v1170_v15 = vld [vmem:[#allocation7 + $0x10] sm:$0xff]   ;;  %v347_v27 = vsub.s32 0, %v1661_v26  ;;  %v459_v46 = vsub.s32 1, %v1661_v26  ;;  %v571_v58 = vsub.s32 2, %v1661_v26  ;;  %p1324_p8 = scmp.ne.s32.totalorder %s791_s8, %s1323_s15 }
  0x78   : > { %v1643_v14 = vld [vmem:[%s1612_s1] sm:$0xff]  ;;  %v1171_v17 = vld [vmem:[#allocation7 + $0x8] sm:$0xff]   ;;  %v1172_v18 = vld [vmem:[#allocation7] sm:$0xff]   ;;  %s1406_s12 = smov [#allocation11]  }
  0x79   : > { %v328_v16 = vpack.c.bf16 %v1643_v14, %v1643_v14  ;;  %v1173_v19 = vld [vmem:[#allocation8 + $0x38] sm:$0xff]   ;;  %v1174_v20 = vld [vmem:[#allocation8 + $0x30] sm:$0xff]   ;;  %v1175_v21 = vld [vmem:[#allocation8 + $0x28] sm:$0xff]   ;;  %p1325_p10 = pnand %p1324_p8, %p1756_p7  ;;  %s1327_s29 = sshll.u32 %s1406_s12, 4  ;;  %s1328_s29 = int_to_ptr.vmem [resolvable:$false] %s1327_s29 }
  0x7a   : > { %989 = vmatpush3.bf16.msra.mxu0 %v1158_v2  ;;  %1009 = vmatpush3.bf16.msra.mxu1 %v1166_v6  ;;  %v1176_v22 = vld [vmem:[#allocation8 + $0x20] sm:$0xff]   ;;  %v1177_v23 = vld [vmem:[#allocation8 + $0x18] sm:$0xff]   ;;  %v1178_v24 = vld [vmem:[#allocation8 + $0x10] sm:$0xff]   ;;  %s1329_s27 = scalar_lea.vmem %s1328_s29, 256  ;;  %p1330_p12 = scmp.lt.s32.totalorder %s791_s8, %s1328_s29 }
  0x7b   : > { %990 = vmatprep.subr.bf16.mxu0 %v1404_v0  ;;  %1010 = vmatprep.subr.bf16.mxu1 %v1404_v0  ;;  %v1667_v28 = vld [vmem:[%s1735_s5] sm:$0xff]  ;;  %v1179_v38 = vld [vmem:[#allocation8 + $0x8] sm:$0xff]   ;;  %v1180_v39 = vld [vmem:[#allocation8] sm:$0xff]   ;;  %p1326_p0 = pneg %p1325_p10  ;;  %p1331_p2 = scmp.lt.s32.totalorder %s1329_s27, %s1323_s15 }
  0x7c   : > { %v348_v29 = vrot.slane %v1667_v28, %v347_v27  ;;  %v1181_v40 = vld [vmem:[#allocation10 + $0x38] sm:$0xff]   ;;  %v1182_v41 = vld [vmem:[#allocation10 + $0x30] sm:$0xff]   ;;  %v1183_v42 = vld [vmem:[#allocation10 + $0x28] sm:$0xff]   ;;  %v460_v47 = vrot.slane %v1667_v28, %v459_v46  ;;  %v572_v59 = vrot.slane %v1667_v28, %v571_v58 }
  0x7d   : > { %v1184_v43 = vld [vmem:[#allocation10 + $0x20] sm:$0xff]   ;;  %v1185_v44 = vld [vmem:[#allocation10 + $0x18] sm:$0xff]   ;;  %v1186_v45 = vld [vmem:[#allocation10 + $0x10] sm:$0xff]   ;;  %p1332_p9 = por %p1331_p2, %p1330_p12 }
  0x7e   : > { %991 = vmatpush3.bf16.msra.mxu0 %v1159_v3  ;;  %1011 = vmatpush3.bf16.msra.mxu1 %v1167_v8  ;;  %v1187_v56 = vld [vmem:[#allocation10 + $0x8] sm:$0xff]   ;;  %v1188_v57 = vld [vmem:[#allocation10] sm:$0xff]  }
  0x7f   : > { %992 = vmatprep.subr.bf16.mxu0 %v1404_v0  ;;  %1012 = vmatprep.subr.bf16.mxu1 %v1404_v0  ;;  %p1333_p11 = pnand %p1332_p9, %p1326_p0 }
  0x82   : > { %993 = vmatpush3.bf16.msra.mxu0 %v1160_v5  ;;  %1013 = vmatpush3.bf16.msra.mxu1 %v1168_v10 }
  0x83   : > { %994 = vmatprep.subr.bf16.mxu0 %v1404_v0  ;;  %1014 = vmatprep.subr.bf16.mxu1 %v1404_v0 }
  0x86   : > { %995 = vmatpush3.bf16.msra.mxu0 %v1161_v7  ;;  %1015 = vmatpush3.bf16.msra.mxu1 %v1169_v12 }
  0x87   : > { %996 = vmatprep.subr.bf16.mxu0 %v1404_v0  ;;  %1016 = vmatprep.subr.bf16.mxu1 %v1404_v0 }
  0x8a   : > { %997 = vmatpush3.bf16.msra.mxu0 %v1162_v9  ;;  %1017 = vmatpush3.bf16.msra.mxu1 %v1170_v15 }
  0x8b   : > { %998 = vmatprep.subr.bf16.mxu0 %v1404_v0  ;;  %1018 = vmatprep.subr.bf16.mxu1 %v1404_v0 }
  0x8e   : > { %999 = vmatpush3.bf16.msra.mxu0 %v1163_v11  ;;  %1019 = vmatpush3.bf16.msra.mxu1 %v1171_v17 }
  0x8f   : > { %1000 = vmatprep.subr.bf16.mxu0 %v1404_v0  ;;  %1020 = vmatprep.subr.bf16.mxu1 %v1404_v0 }
  0x92   : > { %1001 = vmatpush3.bf16.msra.mxu0 %v1164_v13  ;;  %1021 = vmatpush3.bf16.msra.mxu1 %v1172_v18 }
  0x93   : > { %1026 = vmatprep.subr.bf16.mxu0 %v1404_v0  ;;  %1046 = vmatprep.subr.bf16.mxu1 %v1404_v0 }
  0x95   : > { %1003 = vmatmul.mubr.bf16.vlgmr.msra.gmra.mxu0 %v328_v16 }
  0x96   : > { %1042 = vmatprep.mubr.msk.bf16.mxu0 %vm1405_vm0, %v1404_v0  ;;  %1027 = vmatpush3.bf16.msra.mxu0 %v1173_v19 }
  0x97   : > { %1028 = vmatprep.subr.bf16.mxu0 %v1404_v0 }
  0x9a   : > { %1029 = vmatpush3.bf16.msra.mxu0 %v1174_v20 }
  0x9b   : > { %1030 = vmatprep.subr.bf16.mxu0 %v1404_v0 }
  0x9e   : > { %1031 = vmatpush3.bf16.msra.mxu0 %v1175_v21 }
  0x9f   : > { %1032 = vmatprep.subr.bf16.mxu0 %v1404_v0 }
  0xa2   : > { %1033 = vmatpush3.bf16.msra.mxu0 %v1176_v22 }
  0xa3   : > { %1034 = vmatprep.subr.bf16.mxu0 %v1404_v0 }
  0xa6   : > { %1035 = vmatpush3.bf16.msra.mxu0 %v1177_v23 }
  0xa7   : > { %1036 = vmatprep.subr.bf16.mxu0 %v1404_v0 }
  0xaa   : > { %1037 = vmatpush3.bf16.msra.mxu0 %v1178_v24 }
  0xab   : > { %1038 = vmatprep.subr.bf16.mxu0 %v1404_v0 }
  0xae   : > { %1039 = vmatpush3.bf16.msra.mxu0 %v1179_v38 }
  0xaf   : > { %1040 = vmatprep.subr.bf16.mxu0 %v1404_v0 }
  0xb2   : > { %1041 = vmatpush3.bf16.msra.mxu0 %v1180_v39 }
 0x155   : > { %v431_v30 = vpop.f32.mrf.mxu0 }
 0x156   : > { %v432_v31 = vadd.f32 %v431_v30, %v348_v29 }
 0x157   : > { %v1004_v32 = vpop.f32.mrf.mxu0 }
 0x158   : > { %vm437_vm1 = vcmp.gt.f32.partialorder %v432_v31, 0.0  ;;  %v438_v33 = vmul.f32 0.2, %v432_v31 }
 0x159   : > { %v434_v34 = vpop.f32.mrf.mxu0 }
 0x15a   : > { %v439_v35 = vsel %vm437_vm1, %v432_v31, %v438_v33 }
 0x15b   : > { %v1005_v36 = vpop.f32.mrf.mxu0  ;;  %v440_v37 = vpack.c.bf16 %v439_v35, %v439_v35 }
 0x15d   : > { %1023 = vmatmul.mubr.bf16.vlgmr.msra.gmra.mxu1 %v440_v37 }
 0x15e   : > { %1062 = vmatprep.mubr.msk.bf16.mxu1 %vm1405_vm0, %v1404_v0  ;;  %1047 = vmatpush3.bf16.msra.mxu1 %v1181_v40 }
 0x15f   : > { %1048 = vmatprep.subr.bf16.mxu1 %v1404_v0 }
 0x162   : > { %1049 = vmatpush3.bf16.msra.mxu1 %v1182_v41 }
 0x163   : > { %1050 = vmatprep.subr.bf16.mxu1 %v1404_v0 }
 0x166   : > { %1051 = vmatpush3.bf16.msra.mxu1 %v1183_v42 }
 0x167   : > { %1052 = vmatprep.subr.bf16.mxu1 %v1404_v0 }
 0x16a   : > { %1053 = vmatpush3.bf16.msra.mxu1 %v1184_v43 }
 0x16b   : > { %1054 = vmatprep.subr.bf16.mxu1 %v1404_v0 }
 0x16e   : > { %1055 = vmatpush3.bf16.msra.mxu1 %v1185_v44 }
 0x16f   : > { %1056 = vmatprep.subr.bf16.mxu1 %v1404_v0 }
 0x172   : > { %1057 = vmatpush3.bf16.msra.mxu1 %v1186_v45 }
 0x173   : > { %1058 = vmatprep.subr.bf16.mxu1 %v1404_v0 }
 0x176   : > { %1059 = vmatpush3.bf16.msra.mxu1 %v1187_v56 }
 0x177   : > { %1060 = vmatprep.subr.bf16.mxu1 %v1404_v0  ;;  %v683_v0 = vsub.s32 3, %v1661_v26 }
 0x179   : > { %v684_v5 = vrot.slane %v1667_v28, %v683_v0 }
 0x17a   : > { %1061 = vmatpush3.bf16.msra.mxu1 %v1188_v57 }
 0x21d   : > { %v543_v48 = vpop.f32.mrf.mxu1 }
 0x21e   : > { %v544_v49 = vadd.f32 %v543_v48, %v460_v47 }
 0x21f   : > { %v1024_v50 = vpop.f32.mrf.mxu1 }
 0x220   : > { %vm549_vm2 = vcmp.gt.f32.partialorder %v544_v49, 0.0  ;;  %v550_v51 = vmul.f32 0.2, %v544_v49 }
 0x221   : > { %v546_v52 = vpop.f32.mrf.mxu1 }
 0x222   : > { %v551_v53 = vsel %vm549_vm2, %v544_v49, %v550_v51 }
 0x223   : > { %v552_v54 = vpack.c.bf16 %v551_v53, %v551_v53  ;;  %v1025_v55 = vpop.f32.mrf.mxu1 }
 0x225   : > { %1043 = vmatmul.mubr.bf16.vlgmr.msra.gmra.mxu0 %v552_v54 }
 0x2e5   : > { %v655_v60 = vpop.f32.mrf.mxu0 }
 0x2e6   : > { %v656_v61 = vadd.f32 %v655_v60, %v572_v59 }
 0x2e7   : > { %v1044_v62 = vpop.f32.mrf.mxu0 }
 0x2e8   : > { %vm661_vm3 = vcmp.gt.f32.partialorder %v656_v61, 0.0  ;;  %v662_v63 = vmul.f32 0.2, %v656_v61 }
 0x2e9   : > { %v658_v1 = vpop.f32.mrf.mxu0 }
 0x2ea   : > { %v663_v2 = vsel %vm661_vm3, %v656_v61, %v662_v63 }
 0x2eb   : > { %v664_v3 = vpack.c.bf16 %v663_v2, %v663_v2  ;;  %v1045_v4 = vpop.f32.mrf.mxu0 }
 0x2ed   : > { %1063 = vmatmul.mubr.bf16.vlgmr.msra.gmra.mxu1 %v664_v3 }
 0x3ad   : > { %v767_v6 = vpop.f32.mrf.mxu1 }
 0x3ae   : > { %v768_v7 = vadd.f32 %v767_v6, %v684_v5 }
 0x3af   : > { %v1064_v8 = vpop.f32.mrf.mxu1 }
 0x3b0   : > { %v773_v9 = vadd.f32 %v768_v7, %v1643_v14 }
 0x3b1   : > { %v770_v10 = vpop.f32.mrf.mxu1 }
 0x3b2   : > { %1189 = vtanh.f32 %v773_v9 }
 0x3b3   : > { %v1065_v11 = vpop.f32.mrf.mxu1 }
 0x3bf   : > { %v1190_v12 = vpop.eup %1189 }
 0x3c0   : > { %775 = vst [vmem:[%s324_s30] sm:$0xff] %v1190_v12 }
 0x3c1   : > { %1336 = shalt.err (!%p1333_p11)
}
 0x3c2   : > { %s1337_s13 = scalar_lea.hbm %s1693_s18, 128  ;;  %s1341_s1 = scalar_lea.hbm %s1736_s6, 256 }
 0x3c3   : > { %p1338_p13 = scmp.ne.s32.totalorder %s1693_s18, %s1337_s13  ;;  %p1342_p4 = scmp.lt.s32.totalorder %s1693_s18, %s1736_s6 }
 0x3c4   : > { %p1343_p6 = scmp.lt.s32.totalorder %s1341_s1, %s1337_s13 }
 0x3c5   : > { %p1339_p1 = pnand %p1338_p13, %p1756_p7 }
 0x3c6   : > { %p1344_p5 = por %p1343_p6, %p1342_p4 }
 0x3c7   : > { %p1340_p3 = pneg %p1339_p1 }
 0x3c9   : > { %p1345_p8 = pnand %p1344_p5, %p1340_p3 }
 0x3cb   : > { %1348 = shalt.err (!%p1345_p8)
}
 0x3cc   : > { %1084 = dma.vmem_to_hbm [thread:$0]  (%p1756_p7), %s791_s8, 128, %s1693_s18, %s777_s25  }
 0x3cd PF: > { %s802_s26 = sand.u32 1, %s1383_s21   ;;  %p1757_p10 = scmp.ne.s32.totalorder %s1748_s17, 0 }
 0x3ce   : > { %p1758_p0 = scmp.ge.s32.totalorder %s1395_s24, 2  ;;  %s803_s30 = scalar_lea.sflag [#allocation4], %s802_s26 }
 0x3d0   : > { %p1104_p12 = pnand %p1758_p0, %p1757_p10 }
 0x3d2   : > { %p1105_p2 = pneg %p1104_p12 }
 0x3d4   : > { %1378 = dma.done.wait (%p1105_p2), %s803_s30, 128  }
 0x3d5   : > { %1380 = vsyncadd (%p1105_p2), %s803_s30, 4294967168  ;;  %p21_p9 = scmp.ge.s32.totalorder %s1543_s9, 4   ;;  %s1759_s21 = smov %s1387_s22 }
 0x3d6   : > { %s1760_s22 = smov %s1391_s23  ;;  %s1761_s23 = smov %s1554_s14 }
 0x3d7   : > { %s1762_s24 = smov %s1543_s9  ;;  %23 = sbr.rel (!%p21_p9) target bundleno = 9 (0x9), region = 105 }
 0x3dc   :  { %808 = vsyncpa [#allocation3], 1 }
 0x3dd   :  { %810 = vsyncpa [#allocation3 + $0x1], 1 }
 0x3de   :  { %811 = vsyncpa [#allocation6], 1 }
 0x3df   :  { %812 = vsyncpa [#allocation9], 1 }
 0x3e0   :  { %813 = vsyncpa [#allocation4], 1 }
 0x3e1   :  { %815 = vsyncpa [#allocation4 + $0x1], 1 }

</bundles_post_ra>
